<compile_context>
chip_gen: v5e
topology: v5e:2x2
jax: 0.10.0
libtpu: 0.0.40
codegen_flags: <defaults>
</compile_context>

<pallas_src>
import jax
import jax.numpy as jnp
from jax import lax
from jax.experimental import pallas as pl
from jax.experimental.pallas import tpu as pltpu


def _idwtl_kernel(x_ref, w_ref, o_ref):
    # x_ref: (TR, TC) tile of the flattened (B, N*H) input.
    # w_ref: (1, TC) tile of the flattened weight row (broadcast over rows).
    x = x_ref[...].astype(jnp.float32)
    w = w_ref[...].astype(jnp.float32)
    y = x * w  # (TR, TC) * (1, TC): cheap sublane broadcast on the VPU
    # Exact GELU: 0.5 * y * (1 + erf(y / sqrt(2)))  (matches torch.nn.GELU()).
    inv_sqrt2 = jnp.float32(0.7071067811865476)
    o_ref[...] = (0.5 * y * (1.0 + lax.erf(y * inv_sqrt2))).astype(o_ref.dtype)


def _pick_tile(dim, target, align):
    """Largest tile <= target that is a multiple of `align` and divides `dim`.

    Falls back to the full dimension (single block along that axis), which is
    always legal w.r.t. the (8, 128) rule.
    """
    if dim <= target:
        return dim
    t = (target // align) * align
    while t >= align:
        if dim % t == 0:
            return t
        t -= align
    return dim  # TODO(synk): pathological dims with no aligned divisor use one full block.


def idwtl_forward(x, weight, *, row_tile_target=256, lane_tile_target=2048):
    B, N, H = x.shape
    assert weight.shape == (N, H)

    # Lane-dense 2D view: rows = batch, lanes = N*H (contiguous -> free reshape).
    R, C = B, N * H
    x2 = x.reshape(R, C)
    w2 = weight.reshape(1, C)

    TR = _pick_tile(R, row_tile_target, 8)     # sublane axis: mult of 8 or full dim
    TC = _pick_tile(C, lane_tile_target, 128)  # lane axis: mult of 128 or full dim
    grid = (R // TR, C // TC)

    itemsize = jnp.dtype(x.dtype).itemsize
    cost = pl.CostEstimate(
        flops=8 * R * C,                            # mul + GELU arithmetic
        transcendentals=R * C,                      # one erf per element
        bytes_accessed=(2 * R * C + C) * itemsize,  # read x + write out + read w
    )

    out2 = pl.pallas_call(
        _idwtl_kernel,
        out_shape=jax.ShapeDtypeStruct((R, C), x.dtype),
        grid_spec=pltpu.PrefetchScalarGridSpec(
            num_scalar_prefetch=0,
            grid=grid,
            in_specs=[
                pl.BlockSpec((TR, TC), lambda i, j: (i, j)),
                pl.BlockSpec((1, TC), lambda i, j: (0, j)),
            ],
            out_specs=pl.BlockSpec((TR, TC), lambda i, j: (i, j)),
        ),
        compiler_params=pltpu.CompilerParams(
            dimension_semantics=("parallel", "parallel"),
        ),
        cost_estimate=cost,
    )(x2, w2)

    return out2.reshape(B, N, H)


def idwtl_reference(x, weight):
    y = x * weight[None, :, :]
    return jax.nn.gelu(y, approximate=False)


if __name__ == "__main__":
    key = jax.random.PRNGKey(0)
    k_x, k_w = jax.random.split(key)

    batch = 2
    num_nodes = 16
    hidden_size = 32

    x = jax.random.normal(k_x, (batch, num_nodes, hidden_size), dtype=jnp.float32)
    # nn.init.uniform_(weight, a=15, b=30)
    weight = jax.random.uniform(
        k_w, (num_nodes, hidden_size), dtype=jnp.float32, minval=15.0, maxval=30.0
    )

    out = idwtl_forward(x, weight)
    out = jax.block_until_ready(out)

    ref = idwtl_reference(x, weight)
    assert out.shape == (batch, num_nodes, hidden_size)
    assert jnp.allclose(out, ref, atol=1e-5, rtol=1e-5), "mismatch vs reference"

    print("KERNEL_OK")
</pallas_src>

<mosaic_0001>
module attributes {stable_mosaic.version = 11 : i64} {
  func.func @_idwtl_kernel(%arg0: i32, %arg1: i32, %arg2: memref<2x512xf32, #tpu.memory_space<vmem>>, %arg3: memref<1x512xf32, #tpu.memory_space<vmem>>, %arg4: memref<2x512xf32, #tpu.memory_space<vmem>>) attributes {dimension_semantics = [#tpu.dimension_semantics<parallel>, #tpu.dimension_semantics<parallel>], iteration_bounds = array<i64: 1, 1>, scalar_prefetch = 0 : i64, scratch_operands = 0 : i64, tpu.core_type = #tpu.core_type<tc>, window_params = [{transform_indices = @transform_0, window_bounds = array<i64: 2, 512>}, {transform_indices = @transform_1, window_bounds = array<i64: 1, 512>}, {transform_indices = @transform_2, window_bounds = array<i64: 2, 512>}]} {
    %c0 = arith.constant 0 : index
    %c0_0 = arith.constant 0 : index
    %0 = vector.load %arg2[%c0, %c0_0] : memref<2x512xf32, #tpu.memory_space<vmem>>, vector<2x512xf32>
    %c0_1 = arith.constant 0 : index
    %c0_2 = arith.constant 0 : index
    %1 = vector.load %arg3[%c0_1, %c0_2] : memref<1x512xf32, #tpu.memory_space<vmem>>, vector<1x512xf32>
    %2 = vector.broadcast %1 : vector<1x512xf32> to vector<2x512xf32>
    %3 = arith.mulf %0, %2 : vector<2x512xf32>
    %cst = arith.constant 5.000000e-01 : f32
    %4 = vector.broadcast %cst : f32 to vector<2x512xf32>
    %5 = arith.mulf %4, %3 : vector<2x512xf32>
    %cst_3 = arith.constant 0.707106769 : f32
    %6 = vector.broadcast %cst_3 : f32 to vector<2x512xf32>
    %7 = arith.mulf %3, %6 : vector<2x512xf32>
    %8 = math.erf %7 : vector<2x512xf32>
    %cst_4 = arith.constant 1.000000e+00 : f32
    %9 = vector.broadcast %cst_4 : f32 to vector<2x512xf32>
    %10 = arith.addf %9, %8 : vector<2x512xf32>
    %11 = arith.mulf %5, %10 : vector<2x512xf32>
    %c0_5 = arith.constant 0 : index
    %c0_6 = arith.constant 0 : index
    %12 = vector.load %arg4[%c0_5, %c0_6] : memref<2x512xf32, #tpu.memory_space<vmem>>, vector<2x512xf32>
    tpu.vector_store %arg4[%c0_5, %c0_6], %11 {strides = array<i32>} : memref<2x512xf32, #tpu.memory_space<vmem>>, vector<2x512xf32>,
    return
  }
  func.func @transform_0(%arg0: i32, %arg1: i32) -> (i32, i32) {
    %c0_i32 = arith.constant 0 : i32
    return %arg0, %arg1 : i32, i32
  }
  func.func @transform_1(%arg0: i32, %arg1: i32) -> (i32, i32) {
    %c0_i32 = arith.constant 0 : i32
    %c0_i32_0 = arith.constant 0 : i32
    return %c0_i32, %arg1 : i32, i32
  }
  func.func @transform_2(%arg0: i32, %arg1: i32) -> (i32, i32) {
    %c0_i32 = arith.constant 0 : i32
    return %arg0, %arg1 : i32, i32
  }
}

</mosaic_0001>

<bundles_post_ra>
// kernel: tpu_custom_call.1
= control target key start
LH: loop header
LB: loop body
LE: loop exit
PB: predicated region body
PF: predicated region fallthrough
CT: control target
= control target key end

     0   :  { %7 = vsyncpa [#allocation3], 0  ;;  %s232_s0 = inlined_call_operand.hbm [shape: f32[2,512], index: 0, kind: input, shape index: {}]   ;;  %s233_s1 = inlined_call_operand.hbm [shape: f32[1,512], index: 1, kind: input, shape index: {}]   ;;  %s234_s2 = inlined_call_operand.hbm [shape: f32[2,512], index: 2, kind: output, shape index: {}]  }
   0x1   :  { %8 = vsyncpa [#allocation6], 0 }
   0x2   :  { %9 = vsyncpa [#allocation4], 0  ;;  %s15_s11 = sshll.u32 %s232_s0, 4  ;;  %s205_s12 = smov [#allocation2]   ;;  %s16_s11 = int_to_ptr.hbm [resolvable:$true] %s15_s11 }
   0x3   :  { %s17_s13 = sshll.u32 %s205_s12, 4  ;;  %s26_s16 = sshll.u32 %s233_s1, 4  ;;  %s18_s13 = int_to_ptr.vmem [resolvable:$true] %s17_s13  ;;  %s27_s16 = int_to_ptr.hbm [resolvable:$true] %s26_s16 }
   0x4   :  { %20 = dma.hbm_to_vmem [thread:$0]  %s16_s11, 128, %s18_s13, [#allocation3]  }
   0x5   :  { %s206_s17 = smov [#allocation5]  }
   0x6   :  { %s28_s18 = sshll.u32 %s206_s17, 4  ;;  %s29_s18 = int_to_ptr.vmem [resolvable:$true] %s28_s18 }
   0x7   :  { %31 = dma.hbm_to_vmem [thread:$0]  %s27_s16, 64, %s29_s18, [#allocation6]  }
   0x8   :  { %199 = dma.done.wait [#allocation3], 128  }
   0x9   :  { %200 = vsyncadd [#allocation3], 4294967168 }
   0xa   :  { %201 = dma.done.wait [#allocation6], 64  }
   0xb   :  { %202 = vsyncadd [#allocation6], 4294967232  ;;  %v41_v0 = vld [vmem:[#allocation5] sm:$0xf]  ;;  %vm50_vm0 = vcmask 1041408   ;;  %vm52_vm1 = vcmask 1045508  }
   0xc   :  { %v43_v1 = vperm.slane %v41_v0, 0  ;;  %v44_v2 = vperm.slane %v41_v0, 1  ;;  %v45_v3 = vperm.slane %v41_v0, 2  ;;  %v46_v4 = vperm.slane %v41_v0, 3  ;;  %v40_v8 = vld [vmem:[#allocation2] sm:$0xff]  ;;  %s207_s0 = smov [#allocation7]  }
   0xd   :  { %vm54_vm2 = vcmask 1043456   ;;  %s108_s1 = sshll.u32 %s207_s0, 4  ;;  %s110_s21 = sshll.u32 %s234_s2, 4  ;;  %s109_s1 = int_to_ptr.vmem [resolvable:$true] %s108_s1  ;;  %s111_s21 = int_to_ptr.hbm [resolvable:$true] %s110_s21 }
   0xe   :  { %v47_v5 = vrot.slane %v44_v2, 6  ;;  %v48_v6 = vrot.slane %v45_v3, 4  ;;  %v49_v7 = vrot.slane %v46_v4, 2 }
  0x10   :  { %v51_v9 = vsel %vm50_vm0, %v43_v1, %v47_v5  ;;  %v53_v10 = vsel %vm52_vm1, %v48_v6, %v49_v7 }
  0x11   :  { %v55_v11 = vsel %vm54_vm2, %v51_v9, %v53_v10 }
  0x12   :  { %v57_v12 = vmul.f32 %v55_v11, %v40_v8 }
  0x14   :  { %v59_v13 = vmul.f32 0.70710677, %v57_v12  ;;  %v58_v48 = vmul.f32 0.5, %v57_v12 }
  0x16   :  { %v60_v14 = vmul.f32 %v59_v13, %v59_v13 }
  0x18   :  { %v61_v15 = vmin.f32 %v60_v14, 16.0 }
  0x1a   :  { %v62_v16 = vmul.f32 2.1237322e-06, %v61_v15  ;;  %v73_v17 = vmul.f32 3.8918573e-05, %v61_v15 }
  0x1c   :  { %v63_v18 = vadd.f32 0.00028619796, %v62_v16  ;;  %v74_v19 = vadd.f32 0.001143296, %v73_v17 }
  0x1e   :  { %v64_v20 = vmul.f32 %v63_v18, %v61_v15  ;;  %v75_v21 = vmul.f32 %v74_v19, %v61_v15 }
  0x20   :  { %v65_v22 = vadd.f32 0.0036580483, %v64_v20  ;;  %v76_v23 = vadd.f32 0.014752088, %v75_v21 }
  0x22   :  { %v66_v24 = vmul.f32 %v65_v22, %v61_v15  ;;  %v77_v25 = vmul.f32 %v76_v23, %v61_v15 }
  0x24   :  { %v78_v26 = vadd.f32 0.112945676, %v77_v25  ;;  %v67_v27 = vadd.f32 0.05243302, %v66_v24 }
  0x26   :  { %v79_v28 = vmul.f32 %v78_v26, %v61_v15  ;;  %v68_v30 = vmul.f32 %v67_v27, %v61_v15 }
  0x28   :  { %v80_v29 = vadd.f32 0.4994258, %v79_v28  ;;  %v69_v33 = vadd.f32 0.18741608, %v68_v30 }
  0x2a   :  { %v81_v31 = vmul.f32 %v80_v29, %v61_v15  ;;  %v70_v34 = vmul.f32 %v69_v33, %v61_v15 }
  0x2c   :  { %v82_v32 = vadd.f32 1.0, %v81_v31  ;;  %v71_v37 = vadd.f32 1.1283791, %v70_v34 }
  0x2e   :  { %125 = vrcp.f32 %v82_v32  ;;  %v94_v38 = vand.u32 2147483648, %v82_v32  ;;  %vm88_vm3 = vweird.f32 %v82_v32  ;;  %v92_v40 = vand.u32 2147483647, %v82_v32 }
  0x2f   :  { %v72_v43 = vmul.f32 %v71_v37, %v59_v13 }
  0x30   :  { %v95_v42 = vor.u32 1.1754944e-38, %v94_v38  ;;  %vm93_vm6 = vcmp.eq.f32.partialorder %v92_v40, 8.507059e+37 }
  0x34   :  { %v126_v35 = vpop.eup %125 }
  0x35   :  { %v84_v36 = vmul.f32 %v126_v35, %v82_v32  ;;  %vm89_vm4 = vweird.f32 %v126_v35 }
  0x36   :  { %vm90_vm5 = vmor %vm88_vm3, %vm89_vm4 }
  0x37   :  { %v85_v39 = vsub.f32 1.0, %v84_v36 }
  0x39   :  { %v86_v41 = vmul.f32 %v126_v35, %v85_v39 }
  0x3b   :  { %v87_v44 = vadd.f32 %v126_v35, %v86_v41 }
  0x3d   :  { %v91_v45 = vsel %vm90_vm5, %v126_v35, %v87_v44 }
  0x3e   :  { %v96_v46 = vsel %vm93_vm6, %v95_v42, %v91_v45 }
  0x3f   :  { %v97_v47 = vmul.f32 %v96_v46, %v72_v43 }
  0x41   :  { %v121_v49 = vclamps-f32 %v97_v47, 1.0 }
  0x43   :  { %v100_v50 = vadd.f32 1.0, %v121_v49 }
  0x45   :  { %v101_v51 = vmul.f32 %v100_v50, %v58_v48 }
  0x47   :  { %102 = vst [vmem:[#allocation7] sm:$0xff] %v101_v51 }
  0x48   :  { %113 = dma.vmem_to_hbm [thread:$0]  %s109_s1, 128, %s111_s21, [#allocation4]  }
  0x49   :  { %203 = dma.done.wait [#allocation4], 128  }
  0x4a   :  { %204 = vsyncadd [#allocation4], 4294967168 }
  0x4b   :  { %118 = vsyncpa [#allocation3], 1 }
  0x4c   :  { %119 = vsyncpa [#allocation6], 1 }
  0x4d   :  { %120 = vsyncpa [#allocation4], 1 }

</bundles_post_ra>
